<compile_context>
chip_gen: v6e
topology: v6e:2x2x1
jax: 0.10.0
libtpu: 0.0.40
codegen_flags: <defaults>
</compile_context>

<pallas_src>
import functools
import math

import jax
import jax.numpy as jnp
from jax.experimental import pallas as pl
from jax.experimental.pallas import tpu as pltpu


_VMEM_LIMIT = 32 * 1024 * 1024


def _cdiv(a, b):
    return -(-a // b)


def _round_up(x, m):
    return _cdiv(x, m) * m


def _plan_grid(n, tile_n, num_splits):
    """Pick (tn, tiles_per_split, splits) so that row padding is < 8 rows and
    only the LAST block can be ragged (no block is entirely out of range)."""
    splits = max(int(num_splits), 1)
    g = _round_up(max(_cdiv(n, tile_n), 1), splits)
    tn = _round_up(_cdiv(n, g), 8)
    while g > splits and (g - 1) * tn >= n:
        g -= splits
        tn = _round_up(_cdiv(n, g), 8)
    if (g - 1) * tn >= n:            # n too small to split -> single core path
        return _plan_grid(n, tile_n, 1)
    return tn, g // splits, splits


def _scores_kernel(embeds_ref, wt_ref, b_ref, part_ref, *,
                   n_true, tile_n, tiles_per_split, num_blocks, ragged,
                   tanh_dtype):
    s = pl.program_id(0)   # core-split axis ("parallel")
    i = pl.program_id(1)   # row-tile axis  ("arbitrary", accumulated)

    @pl.when(i == 0)
    def _():
        part_ref[...] = jnp.zeros_like(part_ref)

    M, tn, D = embeds_ref.shape
    Dp = wt_ref.shape[1]

    # One batched fc for all M types in this tile (single MXU weight stage);
    # K stays at D, output is lane-dense Dp.  b is pre-padded/cast f32.
    x = embeds_ref[...].reshape(M * tn, D)
    pre = jnp.dot(x, wt_ref[...], preferred_element_type=jnp.float32) + b_ref[...]
    h = jnp.tanh(pre.astype(tanh_dtype)).reshape(M, tn, Dp)

    gb = s * tiles_per_split + i      # global row-tile index

    if ragged:
        # Only the very last row tile contains rows >= N (unspecified reads):
        # mask it there and nowhere else.
        @pl.when(gb == num_blocks - 1)
        def _():
            row = jax.lax.broadcasted_iota(jnp.int32, (tn, 1), 0) + gb * tile_n
            hm = jnp.where((row < n_true)[None, :, :], h, 0.0)
            part_ref[0] = part_ref[0] + jnp.sum(hm.astype(jnp.float32), axis=1)

        @pl.when(gb != num_blocks - 1)
        def _():
            part_ref[0] = part_ref[0] + jnp.sum(h.astype(jnp.float32), axis=1)
    else:
        part_ref[0] = part_ref[0] + jnp.sum(h.astype(jnp.float32), axis=1)


def _weighted_sum_kernel(beta_ref, embeds_ref, z_ref, *, num_types):
    # z_tile = sum_m beta[m] * embeds[m, tile]; unrolled over the small type
    # axis with beta read as SMEM scalars (no [M, tn, D] temp). Mem-bound.
    acc = embeds_ref[0].astype(jnp.float32) * beta_ref[0]
    for m in range(1, num_types):
        acc = acc + embeds_ref[m].astype(jnp.float32) * beta_ref[m]
    z_ref[...] = acc.astype(z_ref.dtype)


def inter_att_forward(embeds, w, b, att, *, tile_n=1024, matmul_dtype=None,
                      num_splits=1):
    """embeds: [M, N, D]; w: [D, D] (torch Linear weight); b: [D]; att: [1, D].

    matmul_dtype: None keeps the input dtype end to end (exact path, v5e);
        jnp.bfloat16 streams embeds in bf16 and runs MXU + tanh in bf16 with
        f32 accumulation (fast path on v6e/v7x; looser tolerance).
    num_splits: set 2 on v7x to shard the phase-1 N range across both
        TensorCores (harmless / sequential on 1-TC chips).
    """
    M, N, D = embeds.shape
    Dp = _round_up(D, 128)                    # lane-dense fc output / acc dim
    tn, T, S = _plan_grid(N, tile_n, num_splits)
    num_blocks = S * T

    mm_dtype = jnp.dtype(embeds.dtype if matmul_dtype is None else matmul_dtype)
    tanh_dtype = mm_dtype if mm_dtype == jnp.dtype(jnp.bfloat16) else jnp.float32

    # Cast once in the wrapper so both phases stream the narrow dtype from HBM.
    embeds_s = embeds if embeds.dtype == mm_dtype else embeds.astype(mm_dtype)
    # Pad only the OUTPUT feature dim of the weight (padding lanes are zero, so
    # they contribute tanh(0)=0 to the accumulator); pre-cast in the wrapper.
    wt_p = jnp.pad(w.T, ((0, 0), (0, Dp - D))).astype(mm_dtype)   # y = x @ w.T
    b_p = jnp.pad(b.reshape(1, D).astype(jnp.float32), ((0, 0), (0, Dp - D)))

    resident = lambda s, i: (0, 0)            # DMA'd once, stays in VMEM

    # ---- Phase 1: per-split partial accumulators [S, M, Dp] ----------------
    partials = pl.pallas_call(
        functools.partial(_scores_kernel, n_true=N, tile_n=tn,
                          tiles_per_split=T, num_blocks=num_blocks,
                          ragged=(num_blocks * tn != N), tanh_dtype=tanh_dtype),
        out_shape=jax.ShapeDtypeStruct((S, M, Dp), jnp.float32),
        grid=(S, T),
        in_specs=[
            pl.BlockSpec((M, tn, D), lambda s, i: (0, s * T + i, 0)),
            pl.BlockSpec((D, Dp), resident),          # wt (resident)
            pl.BlockSpec((1, Dp), resident),          # bias (resident)
        ],
        out_specs=pl.BlockSpec((1, M, Dp), lambda s, i: (s, 0, 0)),
        compiler_params=pltpu.CompilerParams(
            dimension_semantics=("parallel", "arbitrary"),
            vmem_limit_bytes=_VMEM_LIMIT),
    )(embeds_s, wt_p, b_p)

    # Tiny epilogue in plain JAX: combine splits, att lane-reduce, true mean,
    # softmax over the M types.
    acc = partials.sum(axis=0)                               # [M, Dp]
    scores = (acc[:, :D] @ att.reshape(D).astype(jnp.float32)) / N
    beta = jax.nn.softmax(scores, axis=-1)                   # [M] f32

    # ---- Phase 2: beta-weighted sum of the embeddings -> z [N, D] ----------
    z = pl.pallas_call(
        functools.partial(_weighted_sum_kernel, num_types=M),
        out_shape=jax.ShapeDtypeStruct((N, D), embeds.dtype),
        grid=(num_blocks,),
        in_specs=[
            pl.BlockSpec(memory_space=pltpu.MemorySpace.SMEM),   # beta [M]
            pl.BlockSpec((M, tn, D), lambda i: (0, i, 0)),
        ],
        out_specs=pl.BlockSpec((tn, D), lambda i: (i, 0)),
        compiler_params=pltpu.CompilerParams(
            dimension_semantics=("parallel",),
            vmem_limit_bytes=_VMEM_LIMIT),
    )(beta, embeds_s)

    return z, beta


def _reference_forward(embeds, w, b, att):
    h = jnp.tanh(jnp.einsum("mnd,od->mno", embeds, w) + b[None, None, :])
    sp = h.mean(axis=1)                               # [M, D]
    scores = sp @ att[0]                              # [M]
    beta = jax.nn.softmax(scores)
    z = (embeds * beta[:, None, None]).sum(axis=0)
    return z, beta


def _xavier_normal(key, shape, gain):
    fan_out, fan_in = shape
    std = gain * math.sqrt(2.0 / (fan_in + fan_out))
    return std * jax.random.normal(key, shape, dtype=jnp.float32)


if __name__ == "__main__":
    key = jax.random.PRNGKey(0)
    k_emb, k_w, k_b, k_att, k_emb2 = jax.random.split(key, 5)

    M, N, D = 3, 8, 32   # 3 meta-path types, 8 nodes, hidden_dim=32
    embeds = jax.random.normal(k_emb, (M, N, D), dtype=jnp.float32)
    w = _xavier_normal(k_w, (D, D), gain=1.414)                     # fc.weight
    bound = 1.0 / math.sqrt(D)
    b = jax.random.uniform(k_b, (D,), minval=-bound, maxval=bound,  # fc.bias
                           dtype=jnp.float32)
    att = _xavier_normal(k_att, (1, D), gain=1.414)                 # att param

    # 1) Tiny single-tile case, exact f32 path.
    z_mc, beta = inter_att_forward(embeds, w, b, att)
    jax.block_until_ready((z_mc, beta))
    z_ref, beta_ref = _reference_forward(embeds, w, b, att)
    assert jnp.allclose(z_mc, z_ref, atol=1e-5, rtol=1e-5)
    assert jnp.allclose(beta, beta_ref, atol=1e-5, rtol=1e-5)

    # 2) Multi-tile accumulation + ragged last tile + 2-way core split
    #    (the split is a no-op serial loop on 1-TC chips, 2x on v7x).
    N2 = 520
    embeds2 = jax.random.normal(k_emb2, (M, N2, D), dtype=jnp.float32)
    z2, beta2 = inter_att_forward(embeds2, w, b, att, tile_n=128, num_splits=2)
    jax.block_until_ready((z2, beta2))
    z2_ref, beta2_ref = _reference_forward(embeds2, w, b, att)
    assert jnp.allclose(z2, z2_ref, atol=1e-5, rtol=1e-5)
    assert jnp.allclose(beta2, beta2_ref, atol=1e-5, rtol=1e-5)

    # 3) bf16 streaming / MXU / tanh fast path (v6e & v7x), looser tolerance.
    z3, beta3 = inter_att_forward(embeds2, w, b, att, tile_n=256,
                                  matmul_dtype=jnp.bfloat16)
    jax.block_until_ready((z3, beta3))
    assert jnp.allclose(z3, z2_ref, atol=5e-2, rtol=1e-1)
    assert jnp.allclose(beta3, beta2_ref, atol=5e-2, rtol=1e-1)

    print("KERNEL_OK")
</pallas_src>

<mosaic_0001>
module attributes {stable_mosaic.version = 11 : i64} {
  func.func @_scores_kernel(%arg0: i32, %arg1: i32, %arg2: memref<3x8x32xf32, #tpu.memory_space<vmem>>, %arg3: memref<32x128xf32, #tpu.memory_space<vmem>>, %arg4: memref<1x128xf32, #tpu.memory_space<vmem>>, %arg5: memref<1x3x128xf32, #tpu.memory_space<vmem>>) attributes {dimension_semantics = [#tpu.dimension_semantics<parallel>, #tpu.dimension_semantics<arbitrary>], iteration_bounds = array<i64: 1, 1>, scalar_prefetch = 0 : i64, scratch_operands = 0 : i64, tpu.core_type = #tpu.core_type<tc>, window_params = [{transform_indices = @transform_0, window_bounds = array<i64: 3, 8, 32>}, {pipeline_mode = #tpu.pipeline_mode<synchronous>, transform_indices = @transform_1, window_bounds = array<i64: 32, 128>}, {pipeline_mode = #tpu.pipeline_mode<synchronous>, transform_indices = @transform_2, window_bounds = array<i64: 1, 128>}, {transform_indices = @transform_3, window_bounds = array<i64: 1, 3, 128>}]} {
    %c0_i32 = arith.constant 0 : i32
    %0 = arith.cmpi eq, %arg1, %c0_i32 : i32
    %1 = arith.extui %0 : i1 to i32
    %c0_i32_0 = arith.constant 0 : i32
    %2 = arith.cmpi ne, %1, %c0_i32_0 : i32
    scf.if %2 {
      %cst_14 = arith.constant 0.000000e+00 : f32
      %19 = vector.broadcast %cst_14 : f32 to vector<1x3x128xf32>
      %c0_15 = arith.constant 0 : index
      %c0_16 = arith.constant 0 : index
      %c0_17 = arith.constant 0 : index
      %20 = vector.load %arg5[%c0_15, %c0_16, %c0_17] : memref<1x3x128xf32, #tpu.memory_space<vmem>>, vector<1x3x128xf32>
      tpu.vector_store %arg5[%c0_15, %c0_16, %c0_17], %19 {strides = array<i32>} : memref<1x3x128xf32, #tpu.memory_space<vmem>>, vector<1x3x128xf32>,
    } else {
    }
    %c0 = arith.constant 0 : index
    %c0_1 = arith.constant 0 : index
    %c0_2 = arith.constant 0 : index
    %3 = vector.load %arg2[%c0, %c0_1, %c0_2] : memref<3x8x32xf32, #tpu.memory_space<vmem>>, vector<3x8x32xf32>
    %4 = vector.shape_cast %3 : vector<3x8x32xf32> to vector<24x32xf32>
    %c0_3 = arith.constant 0 : index
    %c0_4 = arith.constant 0 : index
    %5 = vector.load %arg3[%c0_3, %c0_4] : memref<32x128xf32, #tpu.memory_space<vmem>>, vector<32x128xf32>
    %cst = arith.constant dense<0.000000e+00> : vector<24x128xf32>
    %6 = tpu.matmul %4, %5, %cst {dimension_numbers = #tpu.dot_dimension_numbers<[1], [0], [0], [1], [0, 0, 1, 1], [], []>} : vector<24x32xf32>, vector<32x128xf32>, vector<24x128xf32> -> vector<24x128xf32>
    %c0_5 = arith.constant 0 : index
    %c0_6 = arith.constant 0 : index
    %7 = vector.load %arg4[%c0_5, %c0_6] : memref<1x128xf32, #tpu.memory_space<vmem>>, vector<1x128xf32>
    %8 = vector.broadcast %7 : vector<1x128xf32> to vector<24x128xf32>
    %9 = arith.addf %6, %8 : vector<24x128xf32>
    %10 = math.tanh %9 : vector<24x128xf32>
    %11 = vector.shape_cast %10 : vector<24x128xf32> to vector<3x8x128xf32>
    %c0_7 = arith.constant 0 : index
    %c0_8 = arith.constant 0 : index
    %c0_9 = arith.constant 0 : index
    %12 = vector.load %arg5[%c0_7, %c0_8, %c0_9] : memref<1x3x128xf32, #tpu.memory_space<vmem>>, vector<1x3x128xf32>
    %13 = vector.shape_cast %12 : vector<1x3x128xf32> to vector<3x128xf32>
    %cst_10 = arith.constant dense<0.000000e+00> : vector<3x128xf32>
    %14 = vector.multi_reduction <add>, %11, %cst_10 [1] : vector<3x8x128xf32> to vector<3x128xf32>
    %15 = arith.addf %13, %14 : vector<3x128xf32>
    %c0_11 = arith.constant 0 : index
    %c0_12 = arith.constant 0 : index
    %c0_13 = arith.constant 0 : index
    %16 = vector.load %arg5[%c0_11, %c0_12, %c0_13] : memref<1x3x128xf32, #tpu.memory_space<vmem>>, vector<1x3x128xf32>
    %17 = vector.shape_cast %16 : vector<1x3x128xf32> to vector<3x128xf32>
    %18 = vector.shape_cast %15 : vector<3x128xf32> to vector<1x3x128xf32>
    tpu.vector_store %arg5[%c0_11, %c0_12, %c0_13], %18 {strides = array<i32>} : memref<1x3x128xf32, #tpu.memory_space<vmem>>, vector<1x3x128xf32>,
    return
  }
  func.func @transform_0(%arg0: i32, %arg1: i32) -> (i32, i32, i32) {
    %c1_i32 = arith.constant 1 : i32
    %0 = arith.muli %arg0, %c1_i32 : i32
    %1 = arith.addi %0, %arg1 : i32
    %c0_i32 = arith.constant 0 : i32
    %c0_i32_0 = arith.constant 0 : i32
    %c0_i32_1 = arith.constant 0 : i32
    return %c0_i32, %1, %c0_i32_0 : i32, i32, i32
  }
  func.func @transform_1(%arg0: i32, %arg1: i32) -> (i32, i32) {
    %c0_i32 = arith.constant 0 : i32
    %c0_i32_0 = arith.constant 0 : i32
    %c0_i32_1 = arith.constant 0 : i32
    return %c0_i32, %c0_i32_0 : i32, i32
  }
  func.func @transform_2(%arg0: i32, %arg1: i32) -> (i32, i32) {
    %c0_i32 = arith.constant 0 : i32
    %c0_i32_0 = arith.constant 0 : i32
    %c0_i32_1 = arith.constant 0 : i32
    return %c0_i32, %c0_i32_0 : i32, i32
  }
  func.func @transform_3(%arg0: i32, %arg1: i32) -> (i32, i32, i32) {
    %c0_i32 = arith.constant 0 : i32
    %c0_i32_0 = arith.constant 0 : i32
    %c0_i32_1 = arith.constant 0 : i32
    return %arg0, %c0_i32, %c0_i32_0 : i32, i32, i32
  }
}

</mosaic_0001>

<bundles_post_ra>
// kernel: tpu_custom_call.1
= control target key start
LH: loop header
LB: loop body
LE: loop exit
PB: predicated region body
PF: predicated region fallthrough
CT: control target
= control target key end

     0   :  { %8 = vsyncpa [#allocation3], 0  ;;  %s332_s0 = inlined_call_operand.hbm [shape: f32[3,8,32], index: 0, kind: input, shape index: {}]   ;;  %s333_s1 = inlined_call_operand.hbm [shape: f32[32,128], index: 1, kind: input, shape index: {}]   ;;  %s334_s2 = inlined_call_operand.vmem [shape: f32[1,128], index: 2, kind: input, shape index: {}]   ;;  %s335_s3 = inlined_call_operand.vmem [shape: f32[1,3,128], index: 3, kind: output, shape index: {}]  }
   0x1   :  { %9 = vsyncpa [#allocation5], 0  ;;  %s285_s12 = smov [#allocation2]  }
   0x2   :  { %s18_s13 = sshll.u32 %s285_s12, 4  ;;  %s19_s13 = int_to_ptr.vmem [resolvable:$true] %s18_s13 }
   0x3   :  { %s249_s14 = scalar_lea.vmem %s19_s13, 384  ;;  %p254_p1 = scmp.lt.s32.totalorder %s19_s13, %s19_s13 }
   0x4   :  { %p250_p0 = scmp.ne.s32.totalorder %s19_s13, %s249_s14  ;;  %p255_p2 = scmp.lt.s32.totalorder %s249_s14, %s249_s14 }
   0x6   :  { %p256_p3 = por %p255_p2, %p254_p1 }
   0x8   :  { %p257_p4 = pnand %p256_p3, %p250_p0 }
   0xa   :  { %260 = shalt.err (!%p257_p4)
}
   0xb   :  { %s286_s15 = smov 128   ;;  %s287_s16 = smov 8  }
   0xc   :  { %24 = dma.hbm_to_vmem [thread:$0]  %s332_s0, 384, %s19_s13, [#allocation3], %s286_s15, %s286_s15, %s287_s16  }
   0xd   :  { %s288_s19 = smov [#allocation4]  }
   0xe   :  { %s30_s20 = sshll.u32 %s288_s19, 4  ;;  %s31_s20 = int_to_ptr.vmem [resolvable:$true] %s30_s20 }
   0xf   :  { %s269_s21 = scalar_lea.vmem %s31_s20, 512  ;;  %p274_p6 = scmp.lt.s32.totalorder %s31_s20, %s31_s20 }
  0x10   :  { %p270_p5 = scmp.ne.s32.totalorder %s31_s20, %s269_s21  ;;  %p275_p7 = scmp.lt.s32.totalorder %s269_s21, %s269_s21 }
  0x12   :  { %p276_p8 = por %p275_p7, %p274_p6 }
  0x14   :  { %p277_p9 = pnand %p276_p8, %p270_p5 }
  0x16   :  { %280 = shalt.err (!%p277_p9)
}
  0x17   :  { %36 = dma.hbm_to_vmem [thread:$0]  %s333_s1, 512, %s31_s20, [#allocation5], %s286_s15, %s286_s15, %s287_s16  }
  0x18   :  { %281 = dma.done.wait [#allocation3], 384  }
  0x19   :  { %282 = vsyncadd [#allocation3], 4294966912 }
  0x1a   :  { %283 = dma.done.wait [#allocation5], 512  }
  0x1b   :  { %284 = vsyncadd [#allocation5], 4294966784  ;;  %v289_v0 = vmov 0.0   ;;  %vm290_vm0 = vmmov 0   ;;  %v57_v1 = vld [vmem:[#allocation4 + $0x18] sm:$0xff]  ;;  %v56_v2 = vld [vmem:[#allocation4 + $0x10] sm:$0xff] }
  0x1c   :  { %50 = vst [vmem:[%s335_s3] sm:$0x7] %v289_v0  ;;  %204 = vmatprep.subr.mxu0 %v289_v0  ;;  %221 = vmatprep.subr.mxu1 %v289_v0  ;;  %v55_v3 = vld [vmem:[#allocation4 + $0x8] sm:$0xff]  ;;  %v54_v4 = vld [vmem:[#allocation4] sm:$0xff]  ;;  %vm65_vm1 = vcmask 261120   ;;  %v52_v6 = vld [vmem:[#allocation2 + $0x8] sm:$0xff]  ;;  %vm180_vm2 = vcmask 1041409  }
  0x1d   :  { %212 = vmatprep.mubr.msk.f32.mxu0 %vm290_vm0, %v289_v0  ;;  %215 = vmatprep.mubr.msk.f32.mxu1 %vm290_vm0, %v289_v0  ;;  %v51_v5 = vld [vmem:[#allocation2] sm:$0xff]  ;;  %v53_v7 = vld [vmem:[#allocation2 + $0x10] sm:$0xff]  ;;  %vm182_vm3 = vcmask 1042434  }
  0x1e   :  { %205 = vmatpush3.msra.mxu0 %v57_v1  ;;  %225 = vmatpush3.msra.mxu1 %v57_v1  ;;  %v193_v8 = vld [vmem:[%s334_s2] ss:$0 sm:$0xff] }
  0x1f   :  { %206 = vmatprep.subr.mxu0 %v289_v0  ;;  %222 = vmatprep.subr.mxu1 %v289_v0 }
  0x20   :  { %207 = vmatpush3.msra.mxu0 %v56_v2  ;;  %226 = vmatpush3.msra.mxu1 %v56_v2 }
  0x21   :  { %208 = vmatprep.subr.mxu0 %v289_v0  ;;  %223 = vmatprep.subr.mxu1 %v289_v0 }
  0x22   :  { %209 = vmatpush3.msra.mxu0 %v55_v3  ;;  %227 = vmatpush3.msra.mxu1 %v55_v3 }
  0x23   :  { %210 = vmatprep.subr.mxu0 %v289_v0  ;;  %224 = vmatprep.subr.mxu1 %v289_v0  ;;  %v158_v38 = vld [vmem:[%s335_s3] sm:$0x7] }
  0x24   :  { %211 = vmatpush3.msra.mxu0 %v54_v4  ;;  %228 = vmatpush3.msra.mxu1 %v54_v4 }
  0x25   :  { %213 = vmatmul.mubr.msk.f32.vlgmr.msra.gmra.mxu0 %vm65_vm1, %v51_v5  ;;  %216 = vmatmul.mubr.msk.f32.vlgmr.msra.gmra.mxu1 %vm65_vm1, %v52_v6 }
  0x26   :  { %218 = vmatprep.mubr.msk.f32.mxu1 %vm290_vm0, %v289_v0 }
  0x29   :  { %219 = vmatmul.mubr.msk.f32.gmra.mxu1 %vm65_vm1, %v53_v7 }
  0xe5   :  { %v141_v9 = vpop.f32.mrf.mxu0  ;;  %v146_v10 = vpop.f32.mrf.mxu1 }
  0xe6   :  { %v142_v11 = vadd.f32 %v193_v8, %v141_v9  ;;  %v147_v12 = vadd.f32 %v193_v8, %v146_v10 }
  0xe7   :  { %v217_v13 = vpop.f32.mrf.mxu1  ;;  %v214_v14 = vpop.f32.mrf.mxu0 }
  0xe8   :  { %235 = vtanh.f32 %v142_v11 }
  0xe9   :  { %237 = vtanh.f32 %v147_v12  ;;  %v151_v15 = vpop.f32.mrf.mxu1 }
  0xea   :  { %v152_v16 = vadd.f32 %v193_v8, %v151_v15 }
  0xeb   :  { %v220_v17 = vpop.f32.mrf.mxu1 }
  0xec   :  { %239 = vtanh.f32 %v152_v16 }
  0xf5   :  { %v236_v18 = vpop.eup %235 }
  0xf6   :  { %v238_v19 = vpop.eup %237  ;;  %v159_v20 = vrot.slane %v236_v18, 4 }
  0xf7   :  { %v165_v21 = vrot.slane %v238_v19, 4 }
  0xf8   :  { %v160_v22 = vadd.f32 %v236_v18, %v159_v20 }
  0xf9   :  { %v240_v23 = vpop.eup %239  ;;  %v166_v24 = vadd.f32 %v238_v19, %v165_v21 }
  0xfa   :  { %v161_v25 = vrot.slane %v160_v22, 2  ;;  %v171_v26 = vrot.slane %v240_v23, 4 }
  0xfb   :  { %v167_v27 = vrot.slane %v166_v24, 2 }
  0xfc   :  { %v162_v28 = vadd.f32 %v161_v25, %v160_v22  ;;  %v172_v29 = vadd.f32 %v240_v23, %v171_v26 }
  0xfd   :  { %v168_v30 = vadd.f32 %v167_v27, %v166_v24 }
  0xfe   :  { %v163_v31 = vrot.slane %v162_v28, 1  ;;  %v173_v32 = vrot.slane %v172_v29, 2 }
  0xff   :  { %v169_v33 = vrot.slane %v168_v30, 1 }
 0x100   :  { %v174_v34 = vadd.f32 %v173_v32, %v172_v29  ;;  %v164_v35 = vadd.f32 %v163_v31, %v162_v28 }
 0x101   :  { %v170_v36 = vadd.f32 %v169_v33, %v168_v30 }
 0x102   :  { %v175_v37 = vrot.slane %v174_v34, 1 }
 0x103   :  { %v181_v40 = vsel %vm180_vm2, %v170_v36, %v164_v35 }
 0x104   :  { %v176_v39 = vadd.f32 %v175_v37, %v174_v34 }
 0x106   :  { %v183_v41 = vsel %vm182_vm3, %v176_v39, %v181_v40 }
 0x107   :  { %v185_v42 = vadd.f32 %v183_v41, %v158_v38 }
 0x109   :  { %186 = vst [vmem:[%s335_s3] sm:$0x7] %v185_v42 }
 0x10a   :  { %191 = vsyncpa [#allocation3], 1 }
 0x10b   :  { %192 = vsyncpa [#allocation5], 1 }

</bundles_post_ra>
